<compile_context>
chip_gen: v6e
topology: v6e:2x2x1
jax: 0.10.0
libtpu: 0.0.40
codegen_flags: <defaults>
</compile_context>

<pallas_src>
import functools

import numpy as np
import jax
import jax.numpy as jnp
from jax.experimental import pallas as pl
from jax.experimental.pallas import tpu as pltpu


def _mlp_kernel(x_ref, mask_ref, w1_ref, b1_ref, wdw_ref, bdw_ref,
                w2_ref, b2_ref, o_ref, *, W, linear):
    # x_ref   : (R, C_in)  bf16 token block, R = imgs_per_block * H * W rows
    # mask_ref: (R, 9)     f32 border masks, tap k = (dy+1)*3 + (dx+1)
    # w1_ref  : (C_in, Ch) bf16 fc1 weight (stored as x @ w1), b1_ref: (1, Ch) f32
    # wdw_ref : (9, Ch)    f32 depthwise 3x3 weights, bdw_ref: (1, Ch) f32
    # w2_ref  : (Ch, C_out) bf16 fc2 weight, b2_ref: (1, C_out) f32
    # o_ref   : (R, C_out)
    R = x_ref.shape[0]

    # ---- fc1 (MXU, bf16 in / f32 acc) + bias ----
    h = jnp.dot(x_ref[...], w1_ref[...],
                preferred_element_type=jnp.float32) + b1_ref[...]
    if linear:                            # Mlp(linear=True) inserts a ReLU
        h = jnp.maximum(h, 0.0)

    w_taps = wdw_ref[...]                 # (9, Ch) f32
    masks = mask_ref[...]                 # (R, 9) f32

    # ---- depthwise 3x3 conv, padding=1: 9 rolled taps + border masks ----
    # Center tap (always valid) is fused with the bias init; the other 8 taps
    # are sublane rotations (XLU) of the whole token block, with precomputed
    # masks killing any contribution that would leak across image boundaries.
    acc = h * w_taps[4:5, :] + bdw_ref[...]
    for dy in (-1, 0, 1):
        for dx in (-1, 0, 1):
            if dy == 0 and dx == 0:
                continue
            k = (dy + 1) * 3 + (dx + 1)
            s = dy * W + dx               # flat token shift for tap (dy, dx)
            tap = pltpu.roll(h, (-s) % R, axis=0)
            acc = acc + tap * (masks[:, k:k + 1] * w_taps[k:k + 1, :])

    # ---- GELU (EUP) ----
    # TODO(synk): PyTorch nn.GELU uses the exact erf form; the tanh
    # approximation is used here (and in the reference) for robust lowering.
    g = jax.nn.gelu(acc)

    # ---- fc2 (MXU, bf16 in / f32 acc) + bias ----
    out = jnp.dot(g.astype(jnp.bfloat16), w2_ref[...],
                  preferred_element_type=jnp.float32) + b2_ref[...]
    o_ref[...] = out.astype(o_ref.dtype)


def _vmem_limit_bytes():
    """Per-generation scoped-VMEM limit (leaves headroom below physical)."""
    try:
        cap = pltpu.get_tpu_info().vmem_capacity_bytes
    except Exception:
        cap = 64 << 20                    # conservative (v7x-sized) fallback
    return int(min(cap - (16 << 20), 100 << 20))


def _auto_imgs_per_block(B, N, C_in, Ch, C_out, act_budget_bytes,
                         target_rows=512, min_grid=2):
    """Pick imgs_per_block: prefer >=min_grid grid steps (feeds both v7x TCs),
    grow R toward target_rows, stay inside the activation VMEM budget."""
    per_img = N * (2 * 2 * C_in          # x block, bf16, double-buffered
                   + 2 * 2 * C_out       # out block, bf16, double-buffered
                   + 4 * 4 * Ch)         # ~4 live (N, Ch) f32 intermediates
    cands = [d for d in range(1, B + 1)
             if B % d == 0 and d * per_img <= act_budget_bytes]
    if not cands:
        return 1
    pref = [d for d in cands if B // d >= min_grid] or cands
    hit = [d for d in pref if d * N >= target_rows]
    return min(hit) if hit else max(pref)


def mlp_forward(x, w1, b1, wdw, bdw, w2, b2, *, H, W, linear=False,
                imgs_per_block=None, out_dtype=jnp.bfloat16):
    """Mlp forward pass.

    x   : (B, N, C_in) with N == H * W
    w1  : (C_in, Ch),   b1 : (Ch,)
    wdw : (Ch, 1, 3, 3) depthwise conv weight (PyTorch layout), bdw : (Ch,)
    w2  : (Ch, C_out),  b2 : (C_out,)
    returns (B, N, C_out) in `out_dtype` (bf16 by default: accumulation is f32
    in-kernel, only the HBM writeback is narrowed).
    """
    B, N, C_in = x.shape
    assert N == H * W
    Ch = w1.shape[1]
    C_out = w2.shape[1]

    vmem_limit = _vmem_limit_bytes()
    if imgs_per_block is None:
        # Leave room for the (double-buffered) weight blocks + slack.
        w_bytes = 2 * 2 * (C_in * Ch + Ch * C_out) + 4 * (9 + 3) * Ch
        act_budget = max(vmem_limit - w_bytes - (8 << 20), 1 << 20)
        imgs_per_block = _auto_imgs_per_block(B, N, C_in, Ch, C_out, act_budget)
    assert B % imgs_per_block == 0
    R = imgs_per_block * N                  # token rows per grid step
    grid = (B // imgs_per_block,)           # >=2 steps feeds both v7x TCs

    x_flat = x.reshape(B * N, C_in).astype(jnp.bfloat16)

    # Per-token border masks for the 9 taps, precomputed on the host. The
    # pattern repeats every image, so one block-invariant (R, 9) table covers
    # every grid step (single DMA, no in-kernel integer compares).
    tok = np.arange(N)
    rr, cc = tok // W, tok % W
    masks = np.zeros((N, 9), np.float32)
    for dy in (-1, 0, 1):
        for dx in (-1, 0, 1):
            k = (dy + 1) * 3 + (dx + 1)
            masks[:, k] = ((rr >= -dy) & (rr < H - dy) &
                           (cc >= -dx) & (cc < W - dx)).astype(np.float32)
    masks = jnp.asarray(np.tile(masks, (imgs_per_block, 1)))      # (R, 9)

    # Depthwise weights as (9, Ch): tap k = ky*3 + kx, lane-dense per tap.
    wdw_taps = wdw.reshape(Ch, 9).transpose(1, 0).astype(jnp.float32)

    kernel = functools.partial(_mlp_kernel, W=W, linear=linear)
    bcast = lambda i: (0, 0)

    out_bytes = jnp.dtype(out_dtype).itemsize
    cost = pl.CostEstimate(
        flops=int(2 * B * N * (C_in * Ch + Ch * C_out) + 18 * B * N * Ch),
        transcendentals=int(B * N * Ch),
        bytes_accessed=int(B * N * (2 * C_in + out_bytes * C_out)
                           + 2 * (C_in * Ch + Ch * C_out)
                           + 4 * (9 + 3) * Ch + 4 * 9 * R),
    )

    # TODO(synk): at production sizes (Ch = 4*C) on v7x, request
    # pipeline_mode=pl.Buffered(1) on the constant-index weight specs to
    # reclaim the duplicate double-buffer VMEM for larger R.
    out_flat = pl.pallas_call(
        kernel,
        out_shape=jax.ShapeDtypeStruct((B * N, C_out), out_dtype),
        grid_spec=pltpu.PrefetchScalarGridSpec(
            num_scalar_prefetch=0,
            grid=grid,
            in_specs=[
                pl.BlockSpec((R, C_in), lambda i: (i, 0)),      # x block
                pl.BlockSpec((R, 9), bcast),                    # border masks
                pl.BlockSpec((C_in, Ch), bcast),                # fc1 weight
                pl.BlockSpec((1, Ch), bcast),                   # fc1 bias
                pl.BlockSpec((9, Ch), bcast),                   # dw weights
                pl.BlockSpec((1, Ch), bcast),                   # dw bias
                pl.BlockSpec((Ch, C_out), bcast),               # fc2 weight
                pl.BlockSpec((1, C_out), bcast),                # fc2 bias
            ],
            out_specs=pl.BlockSpec((R, C_out), lambda i: (i, 0)),
        ),
        compiler_params=pltpu.CompilerParams(
            dimension_semantics=("parallel",),
            vmem_limit_bytes=vmem_limit),
        cost_estimate=cost,
    )(x_flat, masks,
      w1.astype(jnp.bfloat16), b1.reshape(1, Ch).astype(jnp.float32),
      wdw_taps, bdw.reshape(1, Ch).astype(jnp.float32),
      w2.astype(jnp.bfloat16), b2.reshape(1, C_out).astype(jnp.float32))

    return out_flat.reshape(B, N, C_out)


def _reference(x, w1, b1, wdw, bdw, w2, b2, *, H, W, linear=False):
    """Pure-JAX f32 reference (same tap arithmetic)."""
    B, N, C_in = x.shape
    Ch = w1.shape[1]
    h = jnp.dot(x, w1, preferred_element_type=jnp.float32) + b1       # (B,N,Ch)
    if linear:
        h = jnp.maximum(h, 0.0)
    himg = jnp.transpose(h, (0, 2, 1)).reshape(B, Ch, H, W)
    hp = jnp.pad(himg, ((0, 0), (0, 0), (1, 1), (1, 1)))
    conv = jnp.broadcast_to(bdw.reshape(1, Ch, 1, 1), (B, Ch, H, W))
    for ky in range(3):
        for kx in range(3):
            conv = conv + (wdw[:, 0, ky, kx].reshape(1, Ch, 1, 1)
                           * hp[:, :, ky:ky + H, kx:kx + W])
    hc = jnp.transpose(conv.reshape(B, Ch, N), (0, 2, 1))
    g = jax.nn.gelu(hc)
    return jnp.dot(g, w2, preferred_element_type=jnp.float32) + b2


if __name__ == "__main__":
    key = jax.random.PRNGKey(0)
    ks = jax.random.split(key, 7)

    B, H, W = 2, 8, 8
    N = H * W                                  # seq length = 64 tokens
    C_in = Ch = C_out = 128                    # lane-dense channel dims

    x = jax.random.normal(ks[0], (B, N, C_in), dtype=jnp.float32)
    w1 = jax.random.normal(ks[1], (C_in, Ch), dtype=jnp.float32) * 0.05
    b1 = jax.random.normal(ks[2], (Ch,), dtype=jnp.float32) * 0.05
    wdw = jax.random.normal(ks[3], (Ch, 1, 3, 3), dtype=jnp.float32) * 0.1
    bdw = jax.random.normal(ks[4], (Ch,), dtype=jnp.float32) * 0.05
    w2 = jax.random.normal(ks[5], (Ch, C_out), dtype=jnp.float32) * 0.05
    b2 = jax.random.normal(ks[6], (C_out,), dtype=jnp.float32) * 0.05

    out = jax.block_until_ready(
        mlp_forward(x, w1, b1, wdw, bdw, w2, b2, H=H, W=W))
    ref = jax.block_until_ready(
        _reference(x, w1, b1, wdw, bdw, w2, b2, H=H, W=W))

    # Tolerance absorbs bf16 matmul inputs / bf16 output vs. the f32 XLA
    # reference; real indexing/weight bugs produce errors orders of magnitude
    # larger.
    np.testing.assert_allclose(np.asarray(out.astype(jnp.float32)),
                               np.asarray(ref), rtol=2e-2, atol=2e-2)
    assert out.shape == (B, N, C_out)
    print("KERNEL_OK")
</pallas_src>

<mosaic_0001>
module attributes {stable_mosaic.version = 11 : i64} {
  func.func @_mlp_kernel(%arg0: i32, %arg1: memref<64x128xbf16, #tpu.memory_space<vmem>>, %arg2: memref<64x9xf32, #tpu.memory_space<vmem>>, %arg3: memref<128x128xbf16, #tpu.memory_space<vmem>>, %arg4: memref<1x128xf32, #tpu.memory_space<vmem>>, %arg5: memref<9x128xf32, #tpu.memory_space<vmem>>, %arg6: memref<1x128xf32, #tpu.memory_space<vmem>>, %arg7: memref<128x128xbf16, #tpu.memory_space<vmem>>, %arg8: memref<1x128xf32, #tpu.memory_space<vmem>>, %arg9: memref<64x128xbf16, #tpu.memory_space<vmem>>) attributes {dimension_semantics = [#tpu.dimension_semantics<parallel>], iteration_bounds = array<i64: 2>, scalar_prefetch = 0 : i64, scratch_operands = 0 : i64, tpu.core_type = #tpu.core_type<tc>, window_params = [{transform_indices = @transform_0, window_bounds = array<i64: 64, 128>}, {pipeline_mode = #tpu.pipeline_mode<synchronous>, transform_indices = @transform_1, window_bounds = array<i64: 64, 9>}, {pipeline_mode = #tpu.pipeline_mode<synchronous>, transform_indices = @transform_2, window_bounds = array<i64: 128, 128>}, {pipeline_mode = #tpu.pipeline_mode<synchronous>, transform_indices = @transform_3, window_bounds = array<i64: 1, 128>}, {pipeline_mode = #tpu.pipeline_mode<synchronous>, transform_indices = @transform_4, window_bounds = array<i64: 9, 128>}, {pipeline_mode = #tpu.pipeline_mode<synchronous>, transform_indices = @transform_5, window_bounds = array<i64: 1, 128>}, {pipeline_mode = #tpu.pipeline_mode<synchronous>, transform_indices = @transform_6, window_bounds = array<i64: 128, 128>}, {pipeline_mode = #tpu.pipeline_mode<synchronous>, transform_indices = @transform_7, window_bounds = array<i64: 1, 128>}, {transform_indices = @transform_8, window_bounds = array<i64: 64, 128>}]} {
    %c0 = arith.constant 0 : index
    %c0_0 = arith.constant 0 : index
    %0 = vector.load %arg1[%c0, %c0_0] : memref<64x128xbf16, #tpu.memory_space<vmem>>, vector<64x128xbf16>
    %c0_1 = arith.constant 0 : index
    %c0_2 = arith.constant 0 : index
    %1 = vector.load %arg3[%c0_1, %c0_2] : memref<128x128xbf16, #tpu.memory_space<vmem>>, vector<128x128xbf16>
    %cst = arith.constant dense<0.000000e+00> : vector<64x128xf32>
    %2 = tpu.matmul %0, %1, %cst {dimension_numbers = #tpu.dot_dimension_numbers<[1], [0], [0], [1], [0, 0, 1, 1], [], []>} : vector<64x128xbf16>, vector<128x128xbf16>, vector<64x128xf32> -> vector<64x128xf32>
    %c0_3 = arith.constant 0 : index
    %c0_4 = arith.constant 0 : index
    %3 = vector.load %arg4[%c0_3, %c0_4] : memref<1x128xf32, #tpu.memory_space<vmem>>, vector<1x128xf32>
    %4 = vector.broadcast %3 : vector<1x128xf32> to vector<64x128xf32>
    %5 = arith.addf %2, %4 : vector<64x128xf32>
    %c0_5 = arith.constant 0 : index
    %c0_6 = arith.constant 0 : index
    %6 = vector.load %arg5[%c0_5, %c0_6] : memref<9x128xf32, #tpu.memory_space<vmem>>, vector<9x128xf32>
    %c0_7 = arith.constant 0 : index
    %c0_8 = arith.constant 0 : index
    %7 = vector.load %arg2[%c0_7, %c0_8] : memref<64x9xf32, #tpu.memory_space<vmem>>, vector<64x9xf32>
    %8 = vector.extract_strided_slice %6 {offsets = [4, 0], sizes = [1, 128], strides = [1, 1]} : vector<9x128xf32> to vector<1x128xf32>
    %9 = vector.broadcast %8 : vector<1x128xf32> to vector<64x128xf32>
    %10 = arith.mulf %5, %9 : vector<64x128xf32>
    %c0_9 = arith.constant 0 : index
    %c0_10 = arith.constant 0 : index
    %11 = vector.load %arg6[%c0_9, %c0_10] : memref<1x128xf32, #tpu.memory_space<vmem>>, vector<1x128xf32>
    %12 = vector.broadcast %11 : vector<1x128xf32> to vector<64x128xf32>
    %13 = arith.addf %10, %12 : vector<64x128xf32>
    %c9_i32 = arith.constant 9 : i32
    %14 = tpu.dynamic_rotate %5 by %c9_i32 dim 0 : vector<64x128xf32>, i32 -> vector<64x128xf32>
    %15 = vector.extract_strided_slice %7 {offsets = [0, 0], sizes = [64, 1], strides = [1, 1]} : vector<64x9xf32> to vector<64x1xf32>
    %16 = vector.extract_strided_slice %6 {offsets = [0, 0], sizes = [1, 128], strides = [1, 1]} : vector<9x128xf32> to vector<1x128xf32>
    %17 = vector.broadcast %15 : vector<64x1xf32> to vector<64x128xf32>
    %18 = vector.broadcast %16 : vector<1x128xf32> to vector<64x128xf32>
    %19 = arith.mulf %17, %18 : vector<64x128xf32>
    %20 = arith.mulf %14, %19 : vector<64x128xf32>
    %21 = arith.addf %13, %20 : vector<64x128xf32>
    %c8_i32 = arith.constant 8 : i32
    %22 = tpu.dynamic_rotate %5 by %c8_i32 dim 0 : vector<64x128xf32>, i32 -> vector<64x128xf32>
    %23 = vector.extract_strided_slice %7 {offsets = [0, 1], sizes = [64, 1], strides = [1, 1]} : vector<64x9xf32> to vector<64x1xf32>
    %24 = vector.extract_strided_slice %6 {offsets = [1, 0], sizes = [1, 128], strides = [1, 1]} : vector<9x128xf32> to vector<1x128xf32>
    %25 = vector.broadcast %23 : vector<64x1xf32> to vector<64x128xf32>
    %26 = vector.broadcast %24 : vector<1x128xf32> to vector<64x128xf32>
    %27 = arith.mulf %25, %26 : vector<64x128xf32>
    %28 = arith.mulf %22, %27 : vector<64x128xf32>
    %29 = arith.addf %21, %28 : vector<64x128xf32>
    %c7_i32 = arith.constant 7 : i32
    %30 = tpu.dynamic_rotate %5 by %c7_i32 dim 0 : vector<64x128xf32>, i32 -> vector<64x128xf32>
    %31 = vector.extract_strided_slice %7 {offsets = [0, 2], sizes = [64, 1], strides = [1, 1]} : vector<64x9xf32> to vector<64x1xf32>
    %32 = vector.extract_strided_slice %6 {offsets = [2, 0], sizes = [1, 128], strides = [1, 1]} : vector<9x128xf32> to vector<1x128xf32>
    %33 = vector.broadcast %31 : vector<64x1xf32> to vector<64x128xf32>
    %34 = vector.broadcast %32 : vector<1x128xf32> to vector<64x128xf32>
    %35 = arith.mulf %33, %34 : vector<64x128xf32>
    %36 = arith.mulf %30, %35 : vector<64x128xf32>
    %37 = arith.addf %29, %36 : vector<64x128xf32>
    %c1_i32 = arith.constant 1 : i32
    %38 = tpu.dynamic_rotate %5 by %c1_i32 dim 0 : vector<64x128xf32>, i32 -> vector<64x128xf32>
    %39 = vector.extract_strided_slice %7 {offsets = [0, 3], sizes = [64, 1], strides = [1, 1]} : vector<64x9xf32> to vector<64x1xf32>
    %40 = vector.extract_strided_slice %6 {offsets = [3, 0], sizes = [1, 128], strides = [1, 1]} : vector<9x128xf32> to vector<1x128xf32>
    %41 = vector.broadcast %39 : vector<64x1xf32> to vector<64x128xf32>
    %42 = vector.broadcast %40 : vector<1x128xf32> to vector<64x128xf32>
    %43 = arith.mulf %41, %42 : vector<64x128xf32>
    %44 = arith.mulf %38, %43 : vector<64x128xf32>
    %45 = arith.addf %37, %44 : vector<64x128xf32>
    %c63_i32 = arith.constant 63 : i32
    %46 = tpu.dynamic_rotate %5 by %c63_i32 dim 0 : vector<64x128xf32>, i32 -> vector<64x128xf32>
    %47 = vector.extract_strided_slice %7 {offsets = [0, 5], sizes = [64, 1], strides = [1, 1]} : vector<64x9xf32> to vector<64x1xf32>
    %48 = vector.extract_strided_slice %6 {offsets = [5, 0], sizes = [1, 128], strides = [1, 1]} : vector<9x128xf32> to vector<1x128xf32>
    %49 = vector.broadcast %47 : vector<64x1xf32> to vector<64x128xf32>
    %50 = vector.broadcast %48 : vector<1x128xf32> to vector<64x128xf32>
    %51 = arith.mulf %49, %50 : vector<64x128xf32>
    %52 = arith.mulf %46, %51 : vector<64x128xf32>
    %53 = arith.addf %45, %52 : vector<64x128xf32>
    %c57_i32 = arith.constant 57 : i32
    %54 = tpu.dynamic_rotate %5 by %c57_i32 dim 0 : vector<64x128xf32>, i32 -> vector<64x128xf32>
    %55 = vector.extract_strided_slice %7 {offsets = [0, 6], sizes = [64, 1], strides = [1, 1]} : vector<64x9xf32> to vector<64x1xf32>
    %56 = vector.extract_strided_slice %6 {offsets = [6, 0], sizes = [1, 128], strides = [1, 1]} : vector<9x128xf32> to vector<1x128xf32>
    %57 = vector.broadcast %55 : vector<64x1xf32> to vector<64x128xf32>
    %58 = vector.broadcast %56 : vector<1x128xf32> to vector<64x128xf32>
    %59 = arith.mulf %57, %58 : vector<64x128xf32>
    %60 = arith.mulf %54, %59 : vector<64x128xf32>
    %61 = arith.addf %53, %60 : vector<64x128xf32>
    %c56_i32 = arith.constant 56 : i32
    %62 = tpu.dynamic_rotate %5 by %c56_i32 dim 0 : vector<64x128xf32>, i32 -> vector<64x128xf32>
    %63 = vector.extract_strided_slice %7 {offsets = [0, 7], sizes = [64, 1], strides = [1, 1]} : vector<64x9xf32> to vector<64x1xf32>
    %64 = vector.extract_strided_slice %6 {offsets = [7, 0], sizes = [1, 128], strides = [1, 1]} : vector<9x128xf32> to vector<1x128xf32>
    %65 = vector.broadcast %63 : vector<64x1xf32> to vector<64x128xf32>
    %66 = vector.broadcast %64 : vector<1x128xf32> to vector<64x128xf32>
    %67 = arith.mulf %65, %66 : vector<64x128xf32>
    %68 = arith.mulf %62, %67 : vector<64x128xf32>
    %69 = arith.addf %61, %68 : vector<64x128xf32>
    %c55_i32 = arith.constant 55 : i32
    %70 = tpu.dynamic_rotate %5 by %c55_i32 dim 0 : vector<64x128xf32>, i32 -> vector<64x128xf32>
    %71 = vector.extract_strided_slice %7 {offsets = [0, 8], sizes = [64, 1], strides = [1, 1]} : vector<64x9xf32> to vector<64x1xf32>
    %72 = vector.extract_strided_slice %6 {offsets = [8, 0], sizes = [1, 128], strides = [1, 1]} : vector<9x128xf32> to vector<1x128xf32>
    %73 = vector.broadcast %71 : vector<64x1xf32> to vector<64x128xf32>
    %74 = vector.broadcast %72 : vector<1x128xf32> to vector<64x128xf32>
    %75 = arith.mulf %73, %74 : vector<64x128xf32>
    %76 = arith.mulf %70, %75 : vector<64x128xf32>
    %77 = arith.addf %69, %76 : vector<64x128xf32>
    %78 = arith.mulf %77, %77 : vector<64x128xf32>
    %79 = arith.mulf %77, %78 : vector<64x128xf32>
    %cst_11 = arith.constant 4.471500e-02 : f32
    %80 = vector.broadcast %cst_11 : f32 to vector<64x128xf32>
    %81 = arith.mulf %80, %79 : vector<64x128xf32>
    %82 = arith.addf %77, %81 : vector<64x128xf32>
    %cst_12 = arith.constant 0.797884583 : f32
    %83 = vector.broadcast %cst_12 : f32 to vector<64x128xf32>
    %84 = arith.mulf %83, %82 : vector<64x128xf32>
    %85 = math.tanh %84 : vector<64x128xf32>
    %cst_13 = arith.constant 1.000000e+00 : f32
    %86 = vector.broadcast %cst_13 : f32 to vector<64x128xf32>
    %87 = arith.addf %86, %85 : vector<64x128xf32>
    %cst_14 = arith.constant 5.000000e-01 : f32
    %88 = vector.broadcast %cst_14 : f32 to vector<64x128xf32>
    %89 = arith.mulf %88, %87 : vector<64x128xf32>
    %90 = arith.mulf %77, %89 : vector<64x128xf32>
    %91 = arith.truncf %90 : vector<64x128xf32> to vector<64x128xbf16>
    %c0_15 = arith.constant 0 : index
    %c0_16 = arith.constant 0 : index
    %92 = vector.load %arg7[%c0_15, %c0_16] : memref<128x128xbf16, #tpu.memory_space<vmem>>, vector<128x128xbf16>
    %cst_17 = arith.constant dense<0.000000e+00> : vector<64x128xf32>
    %93 = tpu.matmul %91, %92, %cst_17 {dimension_numbers = #tpu.dot_dimension_numbers<[1], [0], [0], [1], [0, 0, 1, 1], [], []>} : vector<64x128xbf16>, vector<128x128xbf16>, vector<64x128xf32> -> vector<64x128xf32>
    %c0_18 = arith.constant 0 : index
    %c0_19 = arith.constant 0 : index
    %94 = vector.load %arg8[%c0_18, %c0_19] : memref<1x128xf32, #tpu.memory_space<vmem>>, vector<1x128xf32>
    %95 = vector.broadcast %94 : vector<1x128xf32> to vector<64x128xf32>
    %96 = arith.addf %93, %95 : vector<64x128xf32>
    %97 = arith.truncf %96 : vector<64x128xf32> to vector<64x128xbf16>
    %c0_20 = arith.constant 0 : index
    %c0_21 = arith.constant 0 : index
    %98 = vector.load %arg9[%c0_20, %c0_21] : memref<64x128xbf16, #tpu.memory_space<vmem>>, vector<64x128xbf16>
    tpu.vector_store %arg9[%c0_20, %c0_21], %97 {strides = array<i32>} : memref<64x128xbf16, #tpu.memory_space<vmem>>, vector<64x128xbf16>,
    return
  }
  func.func @transform_0(%arg0: i32) -> (i32, i32) {
    %c0_i32 = arith.constant 0 : i32
    %c0_i32_0 = arith.constant 0 : i32
    return %arg0, %c0_i32 : i32, i32
  }
  func.func @transform_1(%arg0: i32) -> (i32, i32) {
    %c0_i32 = arith.constant 0 : i32
    %c0_i32_0 = arith.constant 0 : i32
    %c0_i32_1 = arith.constant 0 : i32
    return %c0_i32, %c0_i32_0 : i32, i32
  }
  func.func @transform_2(%arg0: i32) -> (i32, i32) {
    %c0_i32 = arith.constant 0 : i32
    %c0_i32_0 = arith.constant 0 : i32
    %c0_i32_1 = arith.constant 0 : i32
    return %c0_i32, %c0_i32_0 : i32, i32
  }
  func.func @transform_3(%arg0: i32) -> (i32, i32) {
    %c0_i32 = arith.constant 0 : i32
    %c0_i32_0 = arith.constant 0 : i32
    %c0_i32_1 = arith.constant 0 : i32
    return %c0_i32, %c0_i32_0 : i32, i32
  }
  func.func @transform_4(%arg0: i32) -> (i32, i32) {
    %c0_i32 = arith.constant 0 : i32
    %c0_i32_0 = arith.constant 0 : i32
    %c0_i32_1 = arith.constant 0 : i32
    return %c0_i32, %c0_i32_0 : i32, i32
  }
  func.func @transform_5(%arg0: i32) -> (i32, i32) {
    %c0_i32 = arith.constant 0 : i32
    %c0_i32_0 = arith.constant 0 : i32
    %c0_i32_1 = arith.constant 0 : i32
    return %c0_i32, %c0_i32_0 : i32, i32
  }
  func.func @transform_6(%arg0: i32) -> (i32, i32) {
    %c0_i32 = arith.constant 0 : i32
    %c0_i32_0 = arith.constant 0 : i32
    %c0_i32_1 = arith.constant 0 : i32
    return %c0_i32, %c0_i32_0 : i32, i32
  }
  func.func @transform_7(%arg0: i32) -> (i32, i32) {
    %c0_i32 = arith.constant 0 : i32
    %c0_i32_0 = arith.constant 0 : i32
    %c0_i32_1 = arith.constant 0 : i32
    return %c0_i32, %c0_i32_0 : i32, i32
  }
  func.func @transform_8(%arg0: i32) -> (i32, i32) {
    %c0_i32 = arith.constant 0 : i32
    %c0_i32_0 = arith.constant 0 : i32
    return %arg0, %c0_i32 : i32, i32
  }
}

</mosaic_0001>

<bundles_post_ra>
// kernel: tpu_custom_call.1
= control target key start
LH: loop header
LB: loop body
LE: loop exit
PB: predicated region body
PF: predicated region fallthrough
CT: control target
= control target key end

     0   :  { %13 = vsyncpa [#allocation3], 0  ;;  %s2770_s0 = inlined_call_operand.vmem [shape: bf16[128,128], index: 0, kind: input, shape index: {}]   ;;  %s2771_s1 = inlined_call_operand.vmem [shape: f32[64,9], index: 1, kind: input, shape index: {}]   ;;  %s2772_s2 = inlined_call_operand.hbm [shape: bf16[128,128], index: 2, kind: input, shape index: {}]   ;;  %s2773_s3 = inlined_call_operand.vmem [shape: f32[1,128], index: 3, kind: input, shape index: {}]   ;;  %s2774_s4 = inlined_call_operand.vmem [shape: f32[9,128], index: 4, kind: input, shape index: {}]   ;;  %s2775_s5 = inlined_call_operand.vmem [shape: f32[1,128], index: 5, kind: input, shape index: {}]   ;;  %s2776_s6 = inlined_call_operand.hbm [shape: bf16[128,128], index: 6, kind: input, shape index: {}]   ;;  %s2777_s7 = inlined_call_operand.vmem [shape: f32[1,128], index: 7, kind: input, shape index: {}]   ;;  %s2778_s8 = inlined_call_operand.hbm [shape: bf16[128,128], index: 8, kind: output, shape index: {}]  }
   0x1   :  { %14 = vsyncpa [#allocation6], 0 }
   0x2   :  { %15 = vsyncpa [#allocation4], 0 }
   0x3   :  { %17 = vsyncpa [#allocation4 + $0x1], 0  ;;  %s1891_s27 = smov 0   ;;  %s1893_s28 = smov 0  }
   0x4   :  { %s1895_s29 = smov 0   ;;  %s1897_s30 = smov 0  }
   0x5 LB: > { %s1912_s9 = sadd.s32 4294967295, %s1829_s30   ;;  %s1417_s10 = sadd.s32 4294967294, %s1829_s30   ;;  %s1829_s30 = sphi %s1897_s30, %s2867_s30   ;;  %s1825_s29 = sphi %s1895_s29, %s2866_s29   ;;  %s1821_s28 = sphi %s1893_s28, %s2865_s28   ;;  %s1817_s27 = sphi %s1891_s27, %s2864_s27  }
   0x6   : > { %s1916_s11 = sadd.s32 1, %s1829_s30   ;;  %s203_s12 = sadd.s32 1, %s1825_s29 }
   0x7   : > { %s200_s13 = ssub.s32 %s1829_s30, %s1916_s11  ;;  %p213_p0 = scmp.ne.s32.totalorder %s1825_s29, %s1821_s28 }
   0x8   : > { %p201_p1 = scmp.eq.s32.totalorder %s200_s13, 0  ;;  %p214_p2 = scmp.eq.s32.totalorder %s1912_s9, 1 }
   0x9   : > { %p219_p3 = scmp.ne.s32.totalorder %s1821_s28, %s1817_s27  ;;  %p220_p4 = scmp.eq.s32.totalorder %s1417_s10, 1 }
   0xa   : > { %s1927_s14 = scalar_select %p201_p1, %s1825_s29, %s203_s12  }
   0xb   : > { %p1929_p5 = por %p214_p2, %p213_p0  ;;  %p1933_p6 = por %p220_p4, %p219_p3 }
   0xc   : > { %p1418_p7 = scmp.ge.s32.totalorder %s1829_s30, 1  ;;  %p227_p8 = scmp.lt.s32.totalorder %s1829_s30, 3 }
   0xd   : > { %s2797_s16 = scalar_select %p1933_p6, 1, 0 }
   0xe   : > { %p2779_p9 = scmp.eq.s32.totalorder %s1912_s9, 0  ;;  %p1940_p10 = pnand %p1418_p7, %p227_p8 }
   0xf   : > { %s1831_s18 = smov [#allocation2]   ;;  %s1832_s21 = smov [#allocation5]  }
  0x10   : > { %s242_s19 = sshll.u32 %s1831_s18, 4  ;;  %p1579_p11 = pneg %p1940_p10  ;;  %s243_s19 = int_to_ptr.vmem [resolvable:$true] %s242_s19 }
  0x11   : > { %s264_s22 = sshll.u32 %s1832_s21, 4  ;;  %s1720_s23 = scalar_lea.vmem %s243_s19, 1024  ;;  %s265_s22 = int_to_ptr.vmem [resolvable:$true] %s264_s22 }
  0x12   : > { %p1948_p12 = pnand %p2779_p9, %p1579_p11  ;;  %p1721_p0 = scmp.ne.s32.totalorder %s243_s19, %s1720_s23 }
  0x13   : > { %p1728_p3 = scmp.lt.s32.totalorder %s243_s19, %s243_s19  ;;  %p1729_p4 = scmp.lt.s32.totalorder %s1720_s23, %s1720_s23 }
  0x14   : > { %p1711_p13 = pneg %p1948_p12 }
  0x15   : > { %p1730_p7 = por %p1729_p4, %p1728_p3 }
  0x16   : > { %p1723_p1 = pnand %p1721_p0, %p1711_p13 }
  0x18   : > { %p1724_p2 = pneg %p1723_p1 }
  0x1a   : > { %p1731_p8 = pnand %p1730_p7, %p1724_p2 }
  0x1c   : > { %1734 = shalt.err (!%p1731_p8)
}
  0x1d   : > { %s1833_s24 = smov 64   ;;  %s1834_s25 = smov 4  }
  0x1e   : > { %1582 = dma.hbm_to_vmem [thread:$0]  (!%p1948_p12), %s2772_s2, 1024, %s243_s19, [#allocation3], %s1833_s24, %s1833_s24, %s1834_s25  }
  0x1f   : > { %s1746_s12 = scalar_lea.vmem %s265_s22, 1024  ;;  %p1754_p9 = scmp.lt.s32.totalorder %s265_s22, %s265_s22 }
  0x20   : > { %p1747_p11 = scmp.ne.s32.totalorder %s265_s22, %s1746_s12  ;;  %p1755_p6 = scmp.lt.s32.totalorder %s1746_s12, %s1746_s12 }
  0x22   : > { %p1749_p0 = pnand %p1747_p11, %p1711_p13  ;;  %p1756_p3 = por %p1755_p6, %p1754_p9 }
  0x24   : > { %p1750_p1 = pneg %p1749_p0 }
  0x26   : > { %p1757_p2 = pnand %p1756_p3, %p1750_p1 }
  0x28   : > { %1760 = shalt.err (!%p1757_p2)
}
  0x29   : > { %1585 = dma.hbm_to_vmem [thread:$0]  (!%p1948_p12), %s2776_s6, 1024, %s265_s22, [#allocation6], %s1833_s24, %s1833_s24, %s1834_s25  }
  0x2a   : > { %292 = sbr.rel (%p1940_p10) target bundleno = 609 (0x261), region = 52 }
  0x2f   : > { %p2800_p4 = scmp.eq.s32.totalorder %s1912_s9, 0 }
  0x31   : > { %1804 = dma.done.wait (%p2800_p4), [#allocation3], 1024   ;;  %p2801_p13 = pmov %p2800_p4 }
  0x32   : > { %p2802_p7 = pmov %p2800_p4 }
  0x33   : > { %1806 = vsyncadd (%p2801_p13), [#allocation3], 4294966272 }
  0x34   : > { %1808 = dma.done.wait (%p2802_p7), [#allocation6], 1024   ;;  %p2803_p6 = pmov %p2800_p4 }
  0x35   : > { %v1835_v0 = vmov 0   ;;  %s1426_s17 = sshll.u32 %s1912_s9, 3  ;;  %v1986_v1 = vld [vmem:[%s2771_s1 + $0x10] sm:$0xff]  ;;  %v1673_v2 = vld [vmem:[#allocation2 + $0x38] sm:$0xff]   ;;  %v1675_v5 = vld [vmem:[#allocation2 + $0x28] sm:$0xff]   ;;  %v1836_v8 = vmov 1  }
  0x36   : > { %1810 = vsyncadd (%p2803_p6), [#allocation6], 4294966272  ;;  %1642 = vset.pattern.permute.xlu1 %v1835_v0  ;;  %1641 = vset.pattern.permute.xlu0 %v1835_v0  ;;  %p331_p9 = scmp.lt.s32.totalorder %s1426_s17, 15  ;;  %v1992_v3 = vld [vmem:[%s2771_s1 + $0x18] sm:$0xff]  ;;  %v1674_v4 = vld [vmem:[#allocation2 + $0x30] sm:$0xff]   ;;  %v1837_v15 = vmov 2  }
  0x37   : > { %574 = vperm.xlu1 %1642, %v1986_v1   ;;  %1521 = vmatprep.subr.bf16.mxu0 %v1673_v2  ;;  %v1998_v6 = vld [vmem:[%s2771_s1] sm:$0xff]  ;;  %v2004_v7 = vld [vmem:[%s2771_s1 + $0x8] sm:$0xff]  ;;  %v1677_v12 = vld [vmem:[#allocation2 + $0x18] sm:$0xff]   ;;  %v1838_v18 = vmov 3   ;;  %v1839_v23 = vmov 5   ;;  %v1840_v25 = vmov 6  }
  0x38   : > { %s2869_s17 = smov (!%p331_p9, %s1426_s17), 15  ;;  %1522 = vmatpush3.bf16.msra.mxu0 %v1673_v2  ;;  %564 = vperm.xlu0 %1641, %v1998_v6   ;;  %v1676_v9 = vld [vmem:[#allocation2 + $0x20] sm:$0xff]   ;;  %v2018_v11 = vld [vmem:[%s2771_s1 + $0x28] sm:$0xff]  ;;  %v2025_v13 = vld [vmem:[%s2771_s1 + $0x30] sm:$0xff]  ;;  %v1841_v26 = vmov 7   ;;  %v1842_v27 = vmov 8  }
  0x39   : > { %s1427_s23 = sshll.u32 %s2869_s17, 2  ;;  %1523 = vmatprep.subr.bf16.mxu0 %v1674_v4  ;;  %v1678_v14 = vld [vmem:[#allocation2 + $0x10] sm:$0xff]   ;;  %v1679_v16 = vld [vmem:[#allocation2 + $0x8] sm:$0xff]   ;;  %v1680_v17 = vld [vmem:[#allocation2] sm:$0xff]   ;;  %s327_s21 = sand.u32 1, %s1821_s28  }
  0x3a   : > { %s2009_s18 = scalar_lea.vmem %s2770_s0, %s1427_s23  ;;  %v2045_v21 = vld [vmem:[%s2771_s1 + $0x20] sm:$0xff]  ;;  %v2060_v24 = vld [vmem:[%s2771_s1 + $0x38] sm:$0xff]  ;;  %v1686_v42 = vld [vmem:[#allocation5 + $0x30] sm:$0xff]   ;;  %s1425_s24 = sshll.u32 %s327_s21, 5 }
  0x3b   : > { %579 = vperm.xlu1 %1642, %v1992_v3   ;;  %v1681_v10 = vld [vmem:[%s2009_s18] sm:$0xff]   ;;  %v1682_v19 = vld [vmem:[%s2009_s18 + $0x8] sm:$0xff]   ;;  %v1683_v20 = vld [vmem:[%s2009_s18 + $0x10] sm:$0xff]   ;;  %s329_s25 = scalar_lea.vmem [#allocation7], %s1425_s24  ;;  %s1473_s10 = sshll.u32 %s1912_s9, 9 }
  0x3c   : > { %1524 = vmatpush3.bf16.msra.mxu0 %v1674_v4  ;;  %569 = vperm.xlu0 %1641, %v2004_v7   ;;  %v1684_v22 = vld [vmem:[%s2009_s18 + $0x18] sm:$0xff]   ;;  %v1687_v43 = vld [vmem:[#allocation5 + $0x28] sm:$0xff]   ;;  %v1688_v46 = vld [vmem:[#allocation5 + $0x20] sm:$0xff]   ;;  %s1333_s26 = sshll.u32 %s329_s25, 4  ;;  %s2726_s18 = scalar_lea.hbm %s2778_s8, %s1473_s10  ;;  %s2721_s26 = int_to_ptr.vmem [resolvable:$true] %s1333_s26 }
  0x3d   : > { %1525 = vmatprep.subr.bf16.mxu0 %v1675_v5  ;;  %1537 = vmatprep.mubr.bf16.mxu0 %v1681_v10  ;;  %v1685_v39 = vld [vmem:[#allocation5 + $0x38] sm:$0xff]   ;;  %v1690_v52 = vld [vmem:[#allocation5 + $0x10] sm:$0xff]   ;;  %v1691_v55 = vld [vmem:[#allocation5 + $0x8] sm:$0xff]   ;;  %v516_v10 = vlaneseq  ;;  %s2730_s17 = scalar_lea.sflag [#allocation4], %s327_s21  ;;  %s1761_s9 = scalar_lea.vmem %s2721_s26, 512 }
  0x3e   : > { %1545 = vmatprep.subr.bf16.mxu1 %v1685_v39  ;;  %v1689_v49 = vld [vmem:[#allocation5 + $0x18] sm:$0xff]   ;;  %v1692_v58 = vld [vmem:[#allocation5] sm:$0xff]   ;;  %p1762_p10 = scmp.ne.s32.totalorder %s2721_s26, %s1761_s9  ;;  %s1843_s19 = smov [#allocation7]  }
  0x3f   : > { %1643 = vset.pattern.permute.xlu1 %v1836_v8  ;;  %1546 = vmatpush3.bf16.msra.mxu1 %v1685_v39  ;;  %s1765_s20 = sshll.u32 %s1843_s19, 4  ;;  %s1766_s20 = int_to_ptr.vmem [resolvable:$false] %s1765_s20 }
  0x40   : > { %635 = vperm.xlu1 %1643, %v2004_v7   ;;  %1526 = vmatpush3.bf16.msra.mxu0 %v1675_v5  ;;  %p1763_p12 = pnand %p1762_p10, %p1929_p5  ;;  %s1767_s22 = scalar_lea.vmem %s1766_s20, 1024 }
  0x41   : > { %1527 = vmatprep.subr.bf16.mxu0 %v1676_v9  ;;  %589 = vperm.xlu0 %1641, %v2018_v11   ;;  %p1768_p11 = scmp.lt.s32.totalorder %s2721_s26, %s1766_s20  ;;  %p1769_p0 = scmp.lt.s32.totalorder %s1767_s22, %s1761_s9 }
  0x42   : > { %1547 = vmatprep.subr.bf16.mxu1 %v1686_v42  ;;  %p1764_p8 = pneg %p1763_p12 }
  0x43   : > { %1548 = vmatpush3.bf16.msra.mxu1 %v1686_v42  ;;  %p1770_p1 = por %p1769_p0, %p1768_p11 }
  0x44   : > { %639 = vperm.xlu1 %1643, %v1986_v1   ;;  %1528 = vmatpush3.bf16.msra.mxu0 %v1676_v9 }
  0x45   : > { %1529 = vmatprep.subr.bf16.mxu0 %v1677_v12  ;;  %594 = vperm.xlu0 %1641, %v2025_v13   ;;  %p1771_p3 = pnand %p1770_p1, %p1764_p8 }
  0x46   : > { %1549 = vmatprep.subr.bf16.mxu1 %v1687_v43 }
  0x47   : > { %1550 = vmatpush3.bf16.msra.mxu1 %v1687_v43 }
  0x48   : > { %1644 = vset.pattern.permute.xlu1 %v1837_v15  ;;  %1530 = vmatpush3.bf16.msra.mxu0 %v1677_v12  ;;  %v2196_v12 = vshrl.u32 %v516_v10, 7 }
  0x49   : > { %708 = vperm.xlu1 %1644, %v1998_v6   ;;  %1531 = vmatprep.subr.bf16.mxu0 %v1678_v14 }
  0x4a   : > { %1648 = vset.pattern.permute.xlu0 %v1836_v8  ;;  %1551 = vmatprep.subr.bf16.mxu1 %v1688_v46  ;;  %vm553_vm0 = vcmp.lt.s32.totalorder %v2196_v12, 1  ;;  %vm698_vm1 = vcmp.lt.s32.totalorder %v2196_v12, 7 }
  0x4b   : > { %631 = vperm.xlu0 %1648, %v1998_v6   ;;  %1552 = vmatpush3.bf16.msra.mxu1 %v1688_v46 }
  0x4c   : > { %1532 = vmatpush3.bf16.msra.mxu0 %v1678_v14  ;;  %1553 = vmatprep.subr.bf16.mxu1 %v1689_v49 }
  0x4d   : > { %716 = vperm.xlu1 %1644, %v1986_v1   ;;  %1533 = vmatprep.subr.bf16.mxu0 %v1679_v16 }
  0x4f   : > { %643 = vperm.xlu0 %1648, %v1992_v3   ;;  %1554 = vmatpush3.bf16.msra.mxu1 %v1689_v49 }
  0x50   : > { %1534 = vmatpush3.bf16.msra.mxu0 %v1679_v16  ;;  %1555 = vmatprep.subr.bf16.mxu1 %v1690_v52  ;;  %v506_v16 = vld [vmem:[%s2774_s4] sm:$0xff] }
  0x51   : > { %720 = vperm.xlu1 %1644, %v1992_v3   ;;  %1535 = vmatprep.subr.bf16.mxu0 %v1680_v17 }
  0x53   : > { %651 = vperm.xlu0 %1648, %v2018_v11   ;;  %1556 = vmatpush3.bf16.msra.mxu1 %v1690_v52 }
  0x54   : > { %1536 = vmatpush3.bf16.msra.mxu0 %v1680_v17  ;;  %1557 = vmatprep.subr.bf16.mxu1 %v1691_v55  ;;  %v664_v17 = vsub.s32 1, %v2196_v12 }
  0x55   : > { %1645 = vset.pattern.permute.xlu1 %v1838_v18 }
  0x56   : > { %772 = vperm.xlu1 %1645, %v2004_v7  }
  0x57   : > { %1538 = vmatmul.mubr.bf16.vlgmr.msra.gmra.mxu0 %v1682_v19  ;;  %655 = vperm.xlu0 %1648, %v2025_v13   ;;  %v801_v19 = vsub.s32 3, %v2196_v12 }
  0x58   : > { %1541 = vmatprep.mubr.bf16.mxu0 %v1683_v20  ;;  %1558 = vmatpush3.bf16.msra.mxu1 %v1691_v55  ;;  %v861_v20 = vsub.s32 5, %v2196_v12 }
  0x59   : > { %1559 = vmatprep.subr.bf16.mxu1 %v1692_v58  ;;  %v2221_v42 = vrot.slane %v506_v16, %v801_v19 }
  0x5a   : > { %776 = vperm.xlu1 %1645, %v1986_v1   ;;  %v2223_v43 = vrot.slane %v506_v16, %v861_v20 }
  0x5b   : > { %1653 = vset.pattern.permute.xlu0 %v1837_v15  ;;  %2816 = vst [vmem:[#allocation23_spill] sm:$0xff] %v2221_v42 }
  0x5c   : > { %712 = vperm.xlu0 %1653, %v2004_v7   ;;  %1560 = vmatpush3.bf16.msra.mxu1 %v1692_v58  ;;  %2817 = vst [vmem:[#allocation24_spill] sm:$0xff] %v2223_v43 }
  0x5e   : > { %1646 = vset.pattern.permute.xlu1 %v1835_v0 }
  0x5f   : > { %584 = vperm.xlu1 %1646, %v2045_v21   ;;  %1542 = vmatmul.mubr.bf16.gmra.mxu0 %v1684_v22 }
  0x60   : > { %728 = vperm.xlu0 %1653, %v2018_v11  }
  0x63   : > { %1647 = vset.pattern.permute.xlu1 %v1839_v23 }
  0x64   : > { %828 = vperm.xlu1 %1647, %v1998_v6   ;;  %732 = vperm.xlu0 %1653, %v2025_v13  }
  0x68   : > { %832 = vperm.xlu1 %1647, %v2004_v7   ;;  %1658 = vset.pattern.permute.xlu0 %v1838_v18 }
  0x69   : > { %768 = vperm.xlu0 %1658, %v1998_v6  }
  0x6c   : > { %1649 = vset.pattern.permute.xlu1 %v1835_v0 }
  0x6d   : > { %599 = vperm.xlu1 %1649, %v2060_v24   ;;  %780 = vperm.xlu0 %1658, %v1992_v3  }
  0x71   : > { %1650 = vset.pattern.permute.xlu1 %v1839_v23  ;;  %788 = vperm.xlu0 %1658, %v2018_v11  }
  0x72   : > { %840 = vperm.xlu1 %1650, %v1992_v3  }
  0x75   : > { %792 = vperm.xlu0 %1658, %v2025_v13  }
  0x76   : > { %1651 = vset.pattern.permute.xlu1 %v1836_v8 }
  0x77   : > { %647 = vperm.xlu1 %1651, %v2045_v21  }
  0x79   : > { %1663 = vset.pattern.permute.xlu0 %v1839_v23 }
  0x7a   : > { %836 = vperm.xlu0 %1663, %v1986_v1  }
  0x7b   : > { %1652 = vset.pattern.permute.xlu1 %v1840_v25 }
  0x7c   : > { %888 = vperm.xlu1 %1652, %v1998_v6  }
  0x7e   : > { %848 = vperm.xlu0 %1663, %v2018_v11  }
  0x80   : > { %892 = vperm.xlu1 %1652, %v2004_v7  }
  0x82   : > { %1667 = vset.pattern.permute.xlu0 %v1840_v25 }
  0x83   : > { %896 = vperm.xlu0 %1667, %v1986_v1  }
  0x84   : > { %1654 = vset.pattern.permute.xlu1 %v1836_v8 }
  0x85   : > { %659 = vperm.xlu1 %1654, %v2060_v24  }
  0x87   : > { %904 = vperm.xlu0 %1667, %v2045_v21  }
  0x89   : > { %1655 = vset.pattern.permute.xlu1 %v1840_v25 }
  0x8a   : > { %900 = vperm.xlu1 %1655, %v1992_v3  }
  0x8b   : > { %916 = vperm.xlu0 %1667, %v2060_v24  }
  0x8e   : > { %1656 = vset.pattern.permute.xlu1 %v1837_v15 }
  0x8f   : > { %724 = vperm.xlu1 %1656, %v2045_v21   ;;  %1669 = vset.pattern.permute.xlu0 %v1841_v26 }
  0x90   : > { %956 = vperm.xlu0 %1669, %v1986_v1  }
  0x93   : > { %1657 = vset.pattern.permute.xlu1 %v1841_v26 }
  0x94   : > { %948 = vperm.xlu1 %1657, %v1998_v6   ;;  %968 = vperm.xlu0 %1669, %v2018_v11  }
  0x98   : > { %952 = vperm.xlu1 %1657, %v2004_v7   ;;  %1671 = vset.pattern.permute.xlu0 %v1842_v27 }
  0x99   : > { %1016 = vperm.xlu0 %1671, %v1986_v1  }
  0x9c   : > { %1659 = vset.pattern.permute.xlu1 %v1837_v15  ;;  %v604_v15 = vsub.s32 0, %v2196_v12 }
  0x9d   : > { %736 = vperm.xlu1 %1659, %v2060_v24   ;;  %1024 = vperm.xlu0 %1671, %v2045_v21  }
  0xa1   : > { %1660 = vset.pattern.permute.xlu1 %v1841_v26  ;;  %1036 = vperm.xlu0 %1671, %v2060_v24  }
  0xa2   : > { %960 = vperm.xlu1 %1660, %v1992_v3  }
  0xa6   : > { %1661 = vset.pattern.permute.xlu1 %v1838_v18 }
  0xa7   : > { %784 = vperm.xlu1 %1661, %v2045_v21  }
  0xab   : > { %1662 = vset.pattern.permute.xlu1 %v1842_v27 }
  0xac   : > { %1008 = vperm.xlu1 %1662, %v1998_v6  }
  0xb0   : > { %1012 = vperm.xlu1 %1662, %v2004_v7  }
  0xb2   : > { %v2102_v28 = vpop.permute.xlu1 %574 }
  0xb3   : > { %v2108_v30 = vpop.permute.xlu0 %564 }
  0xb4   : > { %1664 = vset.pattern.permute.xlu1 %v1838_v18  ;;  %v741_v18 = vsub.s32 2, %v2196_v12 }
  0xb5   : > { %796 = vperm.xlu1 %1664, %v2060_v24  }
  0xb6   : > { %v2106_v29 = vpop.permute.xlu1 %579  ;;  %v2219_v39 = vrot.slane %v506_v16, %v741_v18 }
  0xb7   : > { %v2114_v32 = vpop.permute.xlu0 %569 }
  0xb8   : > { %2815 = vst [vmem:[#allocation22_spill] sm:$0xff] %v2219_v39 }
  0xb9   : > { %1665 = vset.pattern.permute.xlu1 %v1842_v27 }
  0xba   : > { %1020 = vperm.xlu1 %1665, %v1992_v3  }
  0xbb   : > { %v2112_v31 = vpop.permute.xlu1 %635 }
  0xbc   : > { %v2120_v34 = vpop.permute.xlu0 %589 }
  0xbe   : > { %1666 = vset.pattern.permute.xlu1 %v1839_v23 }
  0xbf   : > { %v2117_v33 = vpop.permute.xlu1 %639  ;;  %844 = vperm.xlu1 %1666, %v2045_v21  }
  0xc0   : > { %v2123_v35 = vpop.permute.xlu0 %594 }
  0xc1   : > { %2804 = vst [vmem:[#allocation11_spill] sm:$0xff] %v2123_v35 }
  0xc3   : > { %852 = vperm.xlu1 %1666, %v2025_v13  }
  0xc4   : > { %v2125_v36 = vpop.permute.xlu1 %708 }
  0xc6   : > { %v2130_v38 = vpop.permute.xlu0 %631 }
  0xc7   : > { %856 = vperm.xlu1 %1666, %v2060_v24  }
  0xc8   : > { %v2128_v37 = vpop.permute.xlu1 %716 }
  0xca   : > { %v2135_v41 = vpop.permute.xlu0 %643 }
  0xcb   : > { %1668 = vset.pattern.permute.xlu1 %v1840_v25  ;;  %v981_v25 = vsub.s32 7, %v2196_v12 }
  0xcc   : > { %908 = vperm.xlu1 %1668, %v2018_v11   ;;  %v2133_v40 = vpop.permute.xlu1 %720 }
  0xcd   : > { %v2235_v55 = vrot.slane %v506_v16, %v981_v25 }
  0xce   : > { %v2138_v44 = vpop.permute.xlu0 %651 }
  0xcf   : > { %2819 = vst [vmem:[#allocation26_spill] sm:$0xff] %v2235_v55 }
  0xd0   : > { %912 = vperm.xlu1 %1668, %v2025_v13  }
  0xd1   : > { %v2140_v45 = vpop.permute.xlu1 %772 }
  0xd2   : > { %v2142_v47 = vpop.permute.xlu0 %655 }
  0xd3   : > { %2805 = vst [vmem:[#allocation12_spill] sm:$0xff] %v2142_v47 }
  0xd4   : > { %1670 = vset.pattern.permute.xlu1 %v1841_v26  ;;  %v518_v26 = vsub.s32 4, %v2196_v12 }
  0xd5   : > { %964 = vperm.xlu1 %1670, %v2045_v21   ;;  %v2145_v48 = vpop.permute.xlu1 %776  ;;  %v921_v21 = vsub.s32 6, %v2196_v12 }
  0xd6   : > { %v2239_v10 = vrot.slane %v506_v16, %v518_v26 }
  0xd7   : > { %v2148_v50 = vpop.permute.xlu0 %712  ;;  %v2225_v46 = vrot.slane %v506_v16, %v921_v21 }
  0xd9   : > { %972 = vperm.xlu1 %1670, %v2025_v13   ;;  %2818 = vst [vmem:[#allocation25_spill] sm:$0xff] %v2225_v46 }
  0xda   : > { %v2150_v51 = vpop.permute.xlu1 %584 }
  0xdb   : > { %v2153_v53 = vpop.permute.xlu0 %728 }
  0xdd   : > { %976 = vperm.xlu1 %1670, %v2060_v24   ;;  %v2213_v24 = vrot.slane %v506_v16, %v604_v15 }
  0xdf   : > { %v2155_v54 = vpop.permute.xlu1 %828  ;;  %v2158_v56 = vpop.permute.xlu0 %732  ;;  %2813 = vst [vmem:[#allocation20_spill] sm:$0xff] %v2213_v24  ;;  %v2229_v49 = vmul.f32 %v2213_v24, %v2102_v28  ;;  %v2233_v52 = vmul.f32 %v2213_v24, %v2106_v29  ;;  %v2251_v28 = vmul.f32 %v2213_v24, %v2108_v30  ;;  %v2255_v29 = vmul.f32 %v2213_v24, %v2114_v32 }
  0xe0   : > { %2806 = vst [vmem:[#allocation13_spill] sm:$0xff] %v2158_v56  ;;  %v2277_v32 = vmul.f32 %v2219_v39, %v2133_v40  ;;  %v2295_v40 = vmul.f32 %v2213_v24, %v2150_v51 }
  0xe1   : > { %1672 = vset.pattern.permute.xlu1 %v1842_v27  ;;  %v2217_v27 = vrot.slane %v506_v16, %v664_v17  ;;  %v2261_v16 = vmul.f32 %v2219_v39, %v2125_v36  ;;  %v2281_v36 = vmul.f32 %v2221_v42, %v2140_v45  ;;  %v2299_v45 = vmul.f32 %v2219_v39, %v2148_v50 }
  0xe2   : > { %1028 = vperm.xlu1 %1672, %v2018_v11   ;;  %2823 = vst [vmem:[#allocation30_spill] sm:$0xff] %v2295_v40 }
  0xe3   : > { %v2161_v57 = vpop.permute.xlu1 %832  ;;  %2814 = vst [vmem:[#allocation21_spill] sm:$0xff] %v2217_v27  ;;  %v2243_v15 = vmul.f32 %v2217_v27, %v2112_v31  ;;  %v2247_v17 = vmul.f32 %v2217_v27, %v2117_v33  ;;  %v2265_v31 = vmul.f32 %v2219_v39, %v2128_v37  ;;  %v2269_v33 = vmul.f32 %v2213_v24, %v2120_v34 }
  0xe4   : > { %v2164_v59 = vpop.permute.xlu0 %768  ;;  %v2273_v30 = vmul.f32 %v2217_v27, %v2130_v38  ;;  %v669_v37 = vmul.f32 %v2217_v27, %v2135_v41  ;;  %v2287_v20 = vmul.f32 %v2217_v27, %v2138_v44  ;;  %v2291_v38 = vmul.f32 %v2221_v42, %v2145_v48  ;;  %v2308_v44 = vld [vmem:[%s2773_s3] ss:$0 sm:$0xff] }
  0xe5   : > { %v2303_v41 = vmul.f32 %v2219_v39, %v2153_v53  ;;  %v2313_v48 = vmul.f32 %v2223_v43, %v2155_v54  ;;  %v2317_v51 = vmul.f32 %v2223_v43, %v2161_v57  ;;  %v2325_v53 = vmul.f32 %v2221_v42, %v2164_v59 }
  0xe6   : > { %1032 = vperm.xlu1 %1672, %v2025_v13   ;;  %2822 = vst [vmem:[#allocation29_spill] sm:$0xff] %v2287_v20 }
  0xe7   : > { %2824 = vst [vmem:[#allocation31_spill] sm:$0xff] %v2303_v41 }
  0xe8   : > { %v2166_v60 = vpop.permute.xlu1 %599  ;;  %v2168_v61 = vpop.permute.xlu0 %780 }
  0xe9   : > { %v2321_v50 = vmul.f32 %v2213_v24, %v2166_v60  ;;  %v2341_v60 = vmul.f32 %v2221_v42, %v2168_v61 }
  0xec   : > { %v2172_v63 = vpop.permute.xlu0 %788 }
  0xed   : > { %v2170_v62 = vpop.permute.xlu1 %840  ;;  %2807 = vst [vmem:[#allocation14_spill] sm:$0xff] %v2172_v63 }
  0xee   : > { %v2329_v26 = vmul.f32 %v2223_v43, %v2170_v62 }
  0xf0   : > { %v2176_v1 = vpop.permute.xlu0 %792 }
  0xf1   : > { %2808 = vst [vmem:[#allocation15_spill] sm:$0xff] %v2176_v1 }
  0xf2   : > { %v2174_v0 = vpop.permute.xlu1 %647 }
  0xf3   : > { %v2333_v54 = vmul.f32 %v2217_v27, %v2174_v0 }
  0xf5   : > { %v2180_v3 = vpop.permute.xlu0 %836  ;;  %2825 = vst [vmem:[#allocation32_spill] sm:$0xff] %v2333_v54 }
  0xf6   : > { %v2350_v62 = vmul.f32 %v2223_v43, %v2180_v3 }
  0xf7   : > { %v2178_v2 = vpop.permute.xlu1 %888 }
  0xf8   : > { %v2337_v57 = vmul.f32 %v2225_v46, %v2178_v2 }
  0xf9   : > { %v2184_v5 = vpop.permute.xlu0 %848 }
  0xfa   : > { %2809 = vst [vmem:[#allocation16_spill] sm:$0xff] %v2184_v5 }
  0xfb   : > { %v2182_v4 = vpop.permute.xlu1 %892 }
  0xfc   : > { %v2346_v59 = vmul.f32 %v2225_v46, %v2182_v4 }
  0xfe   : > { %v2188_v7 = vpop.permute.xlu0 %896 }
  0xff   : > { %v2368_v3 = vmul.f32 %v2225_v46, %v2188_v7 }
 0x100   : > { %v2186_v6 = vpop.permute.xlu1 %659 }
 0x101   : > { %v2360_v61 = vmul.f32 %v2217_v27, %v2186_v6 }
 0x102   : > { %v2192_v9 = vpop.permute.xlu0 %904 }
 0x103   : > { %2810 = vst [vmem:[#allocation17_spill] sm:$0xff] %v2192_v9 }
 0x105   : > { %v2190_v8 = vpop.permute.xlu1 %900 }
 0x106   : > { %v2198_v13 = vpop.permute.xlu0 %916  ;;  %v2364_v4 = vmul.f32 %v2225_v46, %v2190_v8  ;;  %v2383_v8 = vld [vmem:[%s2774_s4 + $0x8] ss:$0 sm:$0xff] }
 0x107   : > { %2812 = vst [vmem:[#allocation19_spill] sm:$0xff] %v2198_v13 }
 0x10a   : > { %v2194_v11 = vpop.permute.xlu1 %724 }
 0x10b   : > { %2811 = vst [vmem:[#allocation18_spill] sm:$0xff] %v2194_v11  ;;  %v957_v23 = vpop.permute.xlu0 %956 }
 0x10c   : > { %v2386_v7 = vmul.f32 %v2235_v55, %v957_v23 }
 0x10f   : > { %v2200_v14 = vpop.permute.xlu1 %948  ;;  %v2257_v19 = vpop.permute.xlu0 %968 }
 0x110   : > { %2821 = vst [vmem:[#allocation28_spill] sm:$0xff] %v2257_v19 }
 0x113   : > { %v2211_v22 = vpop.permute.xlu1 %952 }
 0x114   : > { %v1017_v1 = vpop.permute.xlu0 %1016 }
 0x115   : > { %v2400_v9 = vmul.f32 %v2383_v8, %v1017_v1 }
 0x117   : > { %v1539_v18 = vpop.f32.mrf.mxu0 }
 0x118   : > { %v2237_v58 = vpop.permute.xlu1 %736  ;;  %v2353_v0 = vadd.f32 %v1539_v18, %v2308_v44 }
 0x119   : > { %2820 = vst [vmem:[#allocation27_spill] sm:$0xff] %v2237_v58  ;;  %v475_v34 = vpop.f32.mrf.mxu0  ;;  %v2394_v58 = vld [vmem:[%s2775_s5] ss:$0 sm:$0xff] }
 0x11a   : > { %v2356_v2 = vadd.f32 %v2308_v44, %v475_v34  ;;  %v2375_v34 = vmul.f32 %v2235_v55, %v2200_v14  ;;  %v522_v13 = vmul.f32 %v2239_v10, %v2353_v0  ;;  %v545_v14 = vrot.slane %v2353_v0, 7 }
 0x11b   : > { %v1540_v25 = vpop.f32.mrf.mxu0  ;;  %v2403_v23 = vmul.f32 %v669_v37, %v2353_v0  ;;  %v692_v1 = vrot.slane %v2353_v0, 1 }
 0x11c   : > { %2826 = vst [vmem:[#allocation33_spill] sm:$0xff] %v2356_v2  ;;  %v543_v6 = vrot.slane %v2356_v2, 7  ;;  %v2408_v42 = vadd.f32 %v1540_v25, %v2308_v44  ;;  %v690_v27 = vrot.slane %v2356_v2, 1  ;;  %v537_v11 = vadd.f32 %v2394_v58, %v522_v13 }
 0x11d   : > { %v961_v21 = vpop.permute.xlu1 %960  ;;  %v478_v19 = vpop.f32.mrf.mxu0 }
 0x11e   : > { %v2371_v18 = vadd.f32 %v2308_v44, %v478_v19  ;;  %v984_v19 = vmul.f32 %v2235_v55, %v2211_v22  ;;  %v520_v22 = vmul.f32 %v2239_v10, %v2356_v2  ;;  %v523_v37 = vmul.f32 %v2239_v10, %v2408_v42 }
 0x11f   : > { %v1543_v5 = vpop.f32.mrf.mxu0  ;;  %v2438_v41 = vmul.f32 %v2235_v55, %v961_v21 }
 0x120   : > { %v544_v63 = vrot.slane %v2371_v18, 7  ;;  %v691_v56 = vrot.slane %v2371_v18, 1  ;;  %v2413_v47 = vadd.f32 %v1543_v5, %v2308_v44  ;;  %v521_v25 = vmul.f32 %v2239_v10, %v2371_v18 }
 0x121   : > { %v491_v43 = vpop.f32.mrf.mxu0  ;;  %v675_v5 = vmul.f32 %v2243_v15, %v2356_v2  ;;  %v535_v54 = vadd.f32 %v2394_v58, %v520_v22  ;;  %2829 = vst [vmem:[#allocation36_spill] sm:$0xff] %v2438_v41  ;;  %v676_v22 = vmul.f32 %v2247_v17, %v2371_v18  ;;  %v538_v21 = vadd.f32 %v2394_v58, %v523_v37 }
 0x122   : > { %v2397_v46 = vpop.permute.xlu1 %784  ;;  %v2426_v24 = vsel %vm553_vm0, %v543_v6, %v544_v63  ;;  %v549_v35 = vrot.slane %v2413_v47, 7  ;;  %v2445_v15 = vsel %vm698_vm1, %v691_v56, %v692_v1  ;;  %v536_v13 = vadd.f32 %v2394_v58, %v521_v25 }
 0x123   : > { %2827 = vst [vmem:[#allocation34_spill] sm:$0xff] %v2397_v46  ;;  %v2417_v46 = vmul.f32 %v984_v19, %v2353_v0  ;;  %v1544_v39 = vpop.f32.mrf.mxu0  ;;  %v616_v19 = vmul.f32 %v2229_v49, %v2426_v24  ;;  %v2456_v41 = vsel %vm698_vm1, %v690_v27, %v691_v56  ;;  %v753_v17 = vmul.f32 %v2265_v31, %v2445_v15 }
 0x124   : > { %v2432_v0 = vadd.f32 %v1544_v39, %v2308_v44  ;;  %v2484_v31 = vadd.f32 %v2308_v44, %v491_v43 }
 0x125   : > { %2828 = vst [vmem:[#allocation35_spill] sm:$0xff] %v2417_v46  ;;  %v494_v2 = vpop.f32.mrf.mxu0  ;;  %v624_v55 = vadd.f32 %v616_v19, %v537_v11  ;;  %v812_v19 = vmul.f32 %v2281_v36, %v2426_v24  ;;  %v559_v36 = vsel %vm553_vm0, %v544_v63, %v545_v14 }
 0x126   : > { %v550_v40 = vrot.slane %v2432_v0, 7  ;;  %v2793_v49 = vrot.slane %v2432_v0, 1  ;;  %v2469_v37 = vadd.f32 %v2308_v44, %v494_v2  ;;  %v527_v2 = vmul.f32 %v2239_v10, %v2432_v0 }
 0x127   : > { %v2441_v46 = vpop.permute.xlu1 %1008  ;;  %v2831_v44 = vrot.slane %v2408_v42, 7 }
 0x128   : > { %v2460_v20 = vsel %vm553_vm0, %v549_v35, %v550_v40  ;;  %v2464_v39 = vsel %vm553_vm0, %v550_v40, %v543_v6  ;;  %v2477_v56 = vsel %vm698_vm1, %v2793_v49, %v690_v27  ;;  %v684_v40 = vadd.f32 %v676_v22, %v624_v55 }
 0x129   : > { %2830 = vst [vmem:[#allocation37_spill] sm:$0xff] %v2460_v20  ;;  %v614_v11 = vmul.f32 %v2251_v28, %v2460_v20  ;;  %v615_v25 = vmul.f32 %v2255_v29, %v2464_v39  ;;  %v752_v28 = vmul.f32 %v2299_v45, %v2456_v41  ;;  %v674_v49 = vmul.f32 %v2273_v30, %v2432_v0 }
 0x12a   : > { %v761_v55 = vadd.f32 %v753_v17, %v684_v40  ;;  %v751_v22 = vmul.f32 %v2261_v16, %v2477_v56  ;;  %v548_v43 = vrot.slane %v2469_v37, 7  ;;  %v2501_v20 = vsel %vm553_vm0, %v545_v14, %v2831_v44 }
 0x12b   : > { %v2481_v6 = vpop.permute.xlu1 %1012  ;;  %v622_v27 = vadd.f32 %v614_v11, %v535_v54  ;;  %v623_v29 = vadd.f32 %v615_v25, %v536_v13  ;;  %v2832_v30 = vrot.slane %v2408_v42, 1  ;;  %v813_v16 = vmul.f32 %v2291_v38, %v559_v36 }
 0x12c   : > { %v811_v17 = vmul.f32 %v2325_v53, %v2464_v39  ;;  %v617_v11 = vmul.f32 %v2233_v52, %v559_v36  ;;  %v933_v63 = vmul.f32 %v2368_v3, %v2501_v20  ;;  %v871_v38 = vmul.f32 %v2313_v48, %v2456_v41 }
 0x12d   : > { %v682_v45 = vadd.f32 %v674_v49, %v622_v27  ;;  %v683_v54 = vadd.f32 %v675_v5, %v623_v29  ;;  %v2509_v13 = vsel %vm698_vm1, %v692_v1, %v2832_v30  ;;  %v821_v40 = vadd.f32 %v813_v16, %v761_v55 }
 0x12e   : > { %v873_v25 = vmul.f32 %v2350_v62, %v2509_v13  ;;  %v542_v1 = vadd.f32 %v2394_v58, %v527_v2  ;;  %v872_v53 = vmul.f32 %v2317_v51, %v2445_v15  ;;  %v993_v52 = vmul.f32 %v2386_v7, %v2408_v42 }
 0x12f   : > { %v759_v5 = vadd.f32 %v751_v22, %v682_v45  ;;  %v760_v49 = vadd.f32 %v752_v28, %v683_v54  ;;  %v2532_v62 = vsel %vm553_vm0, %v548_v43, %v549_v35  ;;  %v547_v48 = vrot.slane %v2484_v31, 7 }
 0x130   : > { %v2519_v14 = vpop.permute.xlu1 %796  ;;  %v881_v27 = vadd.f32 %v873_v25, %v821_v40  ;;  %v621_v2 = vmul.f32 %v2321_v50, %v2532_v62  ;;  %v681_v51 = vmul.f32 %v2360_v61, %v2413_v47  ;;  %v625_v29 = vadd.f32 %v617_v11, %v538_v21 }
 0x131   : > { %v819_v3 = vadd.f32 %v811_v17, %v759_v5  ;;  %v820_v28 = vadd.f32 %v812_v19, %v760_v49  ;;  %v694_v7 = vrot.slane %v2484_v31, 1  ;;  %v931_v19 = vmul.f32 %v2337_v57, %v2426_v24 }
 0x132   : > { %v941_v44 = vadd.f32 %v933_v63, %v881_v27  ;;  %v629_v45 = vadd.f32 %v621_v2, %v542_v1  ;;  %v525_v54 = vmul.f32 %v2239_v10, %v2469_v37  ;;  %v685_v50 = vadd.f32 %v2403_v23, %v625_v29 }
 0x133   : > { %v879_v55 = vadd.f32 %v871_v38, %v819_v3  ;;  %v880_v22 = vadd.f32 %v872_v53, %v820_v28  ;;  %v754_v30 = vmul.f32 %v2277_v32, %v2509_v13  ;;  %v1043_v61 = vmul.f32 %v2383_v8, %v2441_v46 }
 0x134   : > { %v1001_v21 = vadd.f32 %v993_v52, %v941_v44  ;;  %v2549_v16 = vadd.f32 %v681_v51, %v629_v45  ;;  %v2833_v17 = vrot.slane %v2408_v42, 1  ;;  %v526_v24 = vmul.f32 %v2239_v10, %v2413_v47  ;;  %v2838_v45 = vld [vmem:[#allocation35_spill] sm:$0xff] }
 0x135   : > { %v1021_v35 = vpop.permute.xlu1 %1020  ;;  %v991_v57 = vmul.f32 %v2375_v34, %v2371_v18  ;;  %v762_v23 = vadd.f32 %v754_v30, %v685_v50  ;;  %v814_v32 = vmul.f32 %v2341_v60, %v2501_v20  ;;  %v524_v46 = vmul.f32 %v2239_v10, %v2484_v31 }
 0x136   : > { %v702_v11 = vsel %vm698_vm1, %v2833_v17, %v694_v7  ;;  %v939_v25 = vadd.f32 %v931_v19, %v879_v55  ;;  %v932_v63 = vmul.f32 %v2346_v59, %v559_v36  ;;  %v540_v1 = vadd.f32 %v2394_v58, %v525_v54 }
 0x137   : > { %v1053_v5 = vmul.f32 %v2400_v9, %v702_v11  ;;  %v822_v49 = vadd.f32 %v814_v32, %v762_v23  ;;  %v874_v40 = vmul.f32 %v2329_v26, %v702_v11  ;;  %v2834_v18 = vrot.slane %v2408_v42, 7  ;;  %v2840_v32 = vld [vmem:[#allocation32_spill] sm:$0xff] }
 0x138   : > { %v1051_v10 = vmul.f32 %v1043_v61, %v2445_v15  ;;  %v940_v38 = vadd.f32 %v932_v63, %v880_v22  ;;  %v1044_v9 = vmul.f32 %v2383_v8, %v2481_v6  ;;  %v695_v53 = vrot.slane %v2469_v37, 1  ;;  %v2835_v15 = vld [vmem:[#allocation29_spill] sm:$0xff]  ;;  %v2836_v6 = vld [vmem:[#allocation36_spill] sm:$0xff]  ;;  %v2839_v61 = vld [vmem:[#allocation31_spill] sm:$0xff] }
 0x139   : > { %v2573_v60 = vsel %vm553_vm0, %v2834_v18, %v547_v48  ;;  %v2578_v59 = vadd.f32 %v1053_v5, %v1001_v21  ;;  %v882_v26 = vadd.f32 %v874_v40, %v822_v49  ;;  %v999_v3 = vadd.f32 %v991_v57, %v939_v25  ;;  %v2842_v63 = vld [vmem:[#allocation20_spill] sm:$0xff]  ;;  %v2844_v18 = vld [vmem:[#allocation22_spill] sm:$0xff] }
 0x13a   : > { %v845_v34 = vpop.permute.xlu1 %844  ;;  %v619_v36 = vmul.f32 %v2269_v33, %v2573_v60  ;;  %v934_v52 = vmul.f32 %v2364_v4, %v2573_v60  ;;  %v679_v27 = vmul.f32 %v2835_v15, %v2484_v31  ;;  %v994_v2 = vmul.f32 %v2836_v6, %v2484_v31  ;;  %v2837_v4 = vld [vmem:[#allocation30_spill] sm:$0xff] }
 0x13b   : > { %v1069_v28 = vmul.f32 %v2578_v59, %v2578_v59  ;;  %v701_v29 = vsel %vm698_vm1, %v694_v7, %v695_v53  ;;  %v1046_v55 = vmul.f32 %v2383_v8, %v1021_v35  ;;  %v618_v44 = vmul.f32 %v2837_v4, %v2501_v20  ;;  %v2841_v20 = vld [vmem:[#allocation11_spill] sm:$0xff] }
 0x13c   : > { %v627_v51 = vadd.f32 %v619_v36, %v540_v1  ;;  %v942_v33 = vadd.f32 %v934_v52, %v882_v26  ;;  %v1000_v19 = vadd.f32 %v2838_v45, %v940_v38  ;;  %v539_v50 = vadd.f32 %v2394_v58, %v524_v46  ;;  %v2843_v1 = vld [vmem:[#allocation18_spill] sm:$0xff] }
 0x13d   : > { %v1077_v54 = vmul.f32 %v1069_v28, %v2578_v59  ;;  %v756_v21 = vmul.f32 %v2839_v61, %v701_v29  ;;  %v1054_v57 = vmul.f32 %v1046_v55, %v701_v29  ;;  %v2602_v7 = vadd.f32 %v1051_v10, %v999_v3  ;;  %v2845_v3 = vld [vmem:[#allocation12_spill] sm:$0xff]  ;;  %v2846_v28 = vld [vmem:[#allocation21_spill] sm:$0xff]  ;;  %v2849_v45 = vld [vmem:[#allocation34_spill] sm:$0xff] }
 0x13e   : > { %v2594_v22 = vpop.permute.xlu1 %852  ;;  %v687_v30 = vadd.f32 %v679_v27, %v627_v51  ;;  %v1002_v17 = vadd.f32 %v994_v2, %v942_v33  ;;  %v1052_v35 = vmul.f32 %v1044_v9, %v2509_v13  ;;  %v626_v23 = vadd.f32 %v618_v44, %v539_v50  ;;  %v2847_v2 = vld [vmem:[#allocation13_spill] sm:$0xff] }
 0x13f   : > { %v678_v25 = vmul.f32 %v2840_v32, %v2408_v42  ;;  %v612_v5 = vmul.f32 %v2842_v63, %v2841_v20  ;;  %v747_v38 = vmul.f32 %v2844_v18, %v2843_v1  ;;  %v696_v10 = vrot.slane %v2413_v47, 1 }
 0x140   : > { %v2609_v49 = vadd.f32 %v756_v21, %v687_v30  ;;  %v2611_v40 = vadd.f32 %v1054_v57, %v1002_v17  ;;  %v2616_v26 = vadd.f32 %v1052_v35, %v1000_v19  ;;  %v1085_v9 = vmul.f32 0.044715, %v1077_v54  ;;  %v2850_v19 = vld [vmem:[#allocation23_spill] sm:$0xff]  ;;  %v2851_v17 = vld [vmem:[#allocation17_spill] sm:$0xff] }
 0x141   : > { %v686_v13 = vadd.f32 %v678_v25, %v626_v23  ;;  %v541_v36 = vadd.f32 %v2394_v58, %v526_v24  ;;  %v556_v52 = vsel %vm553_vm0, %v547_v48, %v548_v43  ;;  %v672_v15 = vmul.f32 %v2846_v28, %v2845_v3  ;;  %v2848_v43 = vld [vmem:[#allocation24_spill] sm:$0xff]  ;;  %v2852_v57 = vld [vmem:[#allocation25_spill] sm:$0xff] }
 0x142   : > { %v857_v46 = vpop.permute.xlu1 %856  ;;  %v1070_v42 = vmul.f32 %v2611_v40, %v2611_v40  ;;  %v1067_v27 = vmul.f32 %v2602_v7, %v2602_v7  ;;  %v620_v6 = vmul.f32 %v612_v5, %v556_v52  ;;  %v749_v51 = vmul.f32 %v2844_v18, %v2847_v2 }
 0x143   : > { %v755_v33 = vmul.f32 %v747_v38, %v702_v11  ;;  %v700_v24 = vsel %vm698_vm1, %v695_v53, %v696_v10  ;;  %v1068_v31 = vmul.f32 %v2616_v26, %v2616_v26  ;;  %v867_v48 = vmul.f32 %v2848_v43, %v845_v34 }
 0x144   : > { %v1078_v58 = vmul.f32 %v1070_v42, %v2611_v40  ;;  %v628_v55 = vadd.f32 %v620_v6, %v541_v36  ;;  %v680_v4 = vmul.f32 %v672_v15, %v2469_v37  ;;  %v807_v54 = vmul.f32 %v2850_v19, %v2849_v45  ;;  %v2855_v42 = vld [vmem:[#allocation27_spill] sm:$0xff] }
 0x145   : > { %v1093_v50 = vadd.f32 %v1085_v9, %v2578_v59  ;;  %v763_v30 = vadd.f32 %v755_v33, %v686_v13  ;;  %v757_v61 = vmul.f32 %v749_v51, %v700_v24  ;;  %v1075_v53 = vmul.f32 %v1067_v27, %v2602_v7  ;;  %v2854_v13 = vld [vmem:[#allocation14_spill] sm:$0xff]  ;;  %v1025_v51 = vpop.permute.xlu0 %1024 }
 0x146   : > { %v1086_v11 = vmul.f32 0.044715, %v1078_v58  ;;  %v688_v21 = vadd.f32 %v680_v4, %v628_v55  ;;  %v927_v35 = vmul.f32 %v2852_v57, %v2851_v17  ;;  %v2853_v34 = vrot.slane %v2432_v0, 1  ;;  %v2856_v58 = vld [vmem:[#allocation16_spill] sm:$0xff] }
 0x147   : > { %v909_v44 = vpop.permute.xlu1 %908  ;;  %v815_v25 = vmul.f32 %v807_v54, %v2573_v60  ;;  %v875_v20 = vmul.f32 %v867_v48, %v701_v29  ;;  %v1076_v1 = vmul.f32 %v1068_v31, %v2616_v26  ;;  %v1083_v38 = vmul.f32 0.044715, %v1075_v53  ;;  %v2857_v31 = vld [vmem:[#allocation37_spill] sm:$0xff]  ;;  %v2858_v54 = vld [vmem:[#allocation26_spill] sm:$0xff] }
 0x148   : > { %v2650_v23 = vsel %vm698_vm1, %v696_v10, %v2853_v34  ;;  %v1094_v32 = vadd.f32 %v1086_v11, %v2611_v40  ;;  %v2654_v63 = vadd.f32 %v757_v61, %v688_v21  ;;  %v808_v9 = vmul.f32 %v2850_v19, %v2854_v13 }
 0x149   : > { %v750_v36 = vmul.f32 %v2844_v18, %v2855_v42  ;;  %v810_v12 = vmul.f32 %v2850_v19, %v2519_v14  ;;  %v1101_v10 = vmul.f32 0.7978846, %v1093_v50  ;;  %v823_v3 = vadd.f32 %v815_v25, %v763_v30 }
 0x14a   : > { %v1084_v28 = vmul.f32 0.044715, %v1076_v1  ;;  %v1091_v60 = vadd.f32 %v1083_v38, %v2602_v7  ;;  %v1102_v29 = vmul.f32 0.7978846, %v1094_v32  ;;  %v870_v27 = vmul.f32 %v2848_v43, %v857_v46  ;;  %v2859_v32 = vld [vmem:[#allocation19_spill] sm:$0xff]  ;;  %v1037_v1 = vpop.permute.xlu0 %1036 }
 0x14b   : > { %v913_v5 = vpop.permute.xlu1 %912  ;;  %v758_v15 = vmul.f32 %v750_v36, %v2650_v23  ;;  %v935_v6 = vmul.f32 %v927_v35, %v556_v52  ;;  %1693 = vtanh.f32 %v1101_v10  ;;  %v883_v2 = vadd.f32 %v875_v20, %v823_v3 }
 0x14c   : > { %v1092_v33 = vadd.f32 %v1084_v28, %v2616_v26  ;;  %v1099_v18 = vmul.f32 0.7978846, %v1091_v60  ;;  %1695 = vtanh.f32 %v1102_v29  ;;  %v868_v14 = vmul.f32 %v2848_v43, %v2856_v58 }
 0x14d   : > { %v818_v48 = vmul.f32 %v810_v12, %v2857_v31  ;;  %v1047_v55 = vmul.f32 %v2383_v8, %v1025_v51  ;;  %v766_v45 = vadd.f32 %v758_v15, %v2549_v16  ;;  %v816_v11 = vmul.f32 %v808_v9, %v556_v52  ;;  %v2860_v52 = vld [vmem:[#allocation15_spill] sm:$0xff] }
 0x14e   : > { %v1100_v50 = vmul.f32 0.7978846, %v1092_v33  ;;  %1697 = vtanh.f32 %v1099_v18  ;;  %v928_v30 = vmul.f32 %v2852_v57, %v909_v44  ;;  %v878_v61 = vmul.f32 %v870_v27, %v2477_v56 }
 0x14f   : > { %v943_v21 = vadd.f32 %v935_v6, %v883_v2  ;;  %v876_v17 = vmul.f32 %v868_v14, %v700_v24  ;;  %v824_v35 = vadd.f32 %v816_v11, %v2609_v49  ;;  %v930_v16 = vmul.f32 %v2852_v57, %v2859_v32  ;;  %v2861_v49 = vld [vmem:[#allocation28_spill] sm:$0xff]  ;;  %v2862_v2 = vld [vmem:[#allocation33_spill] sm:$0xff] }
 0x150   : > { %v965_v4 = vpop.permute.xlu1 %964  ;;  %1699 = vtanh.f32 %v1100_v50  ;;  %v826_v25 = vadd.f32 %v818_v48, %v766_v45  ;;  %v1055_v20 = vmul.f32 %v1047_v55, %v700_v24  ;;  %v809_v44 = vmul.f32 %v2850_v19, %v2860_v52 }
 0x151   : > { %v987_v46 = vmul.f32 %v2858_v54, %v965_v4  ;;  %v936_v13 = vmul.f32 %v928_v30, %v2532_v62  ;;  %v988_v36 = vmul.f32 %v2858_v54, %v2861_v49  ;;  %v1050_v12 = vmul.f32 %v2383_v8, %v1037_v1 }
 0x152   : > { %v886_v9 = vadd.f32 %v878_v61, %v826_v25  ;;  %v884_v10 = vadd.f32 %v876_v17, %v824_v35  ;;  %v938_v19 = vmul.f32 %v930_v16, %v2464_v39  ;;  %v817_v60 = vmul.f32 %v809_v44, %v2532_v62 }
 0x153   : > { %v995_v53 = vmul.f32 %v987_v46, %v2469_v37  ;;  %v869_v37 = vmul.f32 %v2848_v43, %v2594_v22  ;;  %v929_v43 = vmul.f32 %v2852_v57, %v913_v5  ;;  %v996_v18 = vmul.f32 %v988_v36, %v2413_v47 }
 0x154   : > { %v973_v34 = vpop.permute.xlu1 %972  ;;  %v944_v22 = vadd.f32 %v936_v13, %v884_v10  ;;  %v946_v6 = vadd.f32 %v938_v19, %v886_v9  ;;  %v1058_v39 = vmul.f32 %v1050_v12, %v2456_v41  ;;  %v825_v62 = vadd.f32 %v817_v60, %v2654_v63 }
 0x155   : > { %v1003_v38 = vadd.f32 %v995_v53, %v943_v21  ;;  %v877_v15 = vmul.f32 %v869_v37, %v2650_v23  ;;  %v989_v58 = vmul.f32 %v2858_v54, %v973_v34  ;;  %v937_v45 = vmul.f32 %v929_v43, %v2857_v31 }
 0x156   : > { %v1004_v46 = vadd.f32 %v996_v18, %v944_v22 }
 0x157   : > { %v2684_v42 = vadd.f32 %v1055_v20, %v1003_v38  ;;  %v885_v30 = vadd.f32 %v877_v15, %v825_v62 }
 0x158   : > { %v977_v24 = vpop.permute.xlu1 %976  ;;  %v1694_v29 = vpop.eup %1693 }
 0x159   : > { %v1071_v3 = vmul.f32 %v2684_v42, %v2684_v42  ;;  %v990_v28 = vmul.f32 %v2858_v54, %v977_v24  ;;  %v1696_v33 = vpop.eup %1695  ;;  %v1117_v14 = vadd.f32 1.0, %v1694_v29  ;;  %v997_v54 = vmul.f32 %v989_v58, %v2432_v0 }
 0x15a   : > { %v1118_v5 = vadd.f32 1.0, %v1696_v33  ;;  %v945_v25 = vadd.f32 %v937_v45, %v885_v30  ;;  %v1443_v45 = vld [vmem:[%s2777_s7] ss:$0 sm:$0xff] }
 0x15b   : > { %v1079_v27 = vmul.f32 %v1071_v3, %v2684_v42  ;;  %v998_v51 = vmul.f32 %v990_v28, %v2862_v2  ;;  %v1698_v4 = vpop.eup %1697  ;;  %v1125_v11 = vmul.f32 0.5, %v1117_v14 }
 0x15c   : > { %v1115_v61 = vadd.f32 1.0, %v1698_v4  ;;  %v1126_v41 = vmul.f32 0.5, %v1118_v5 }
 0x15d   : > { %v1006_v48 = vadd.f32 %v998_v51, %v946_v6  ;;  %v1029_v57 = vpop.permute.xlu1 %1028  ;;  %v1087_v55 = vmul.f32 0.044715, %v1079_v27  ;;  %v1700_v21 = vpop.eup %1699  ;;  %v1133_v53 = vmul.f32 %v1125_v11, %v2578_v59 }
 0x15e   : > { %v1048_v50 = vmul.f32 %v2383_v8, %v1029_v57  ;;  %v1116_v34 = vadd.f32 1.0, %v1700_v21  ;;  %v1123_v31 = vmul.f32 0.5, %v1115_v61  ;;  %v1134_v32 = vmul.f32 %v1126_v41, %v2611_v40 }
 0x15f   : > { %v1066_v47 = vadd.f32 %v1058_v39, %v1006_v48  ;;  %v1095_v17 = vadd.f32 %v1087_v55, %v2684_v42 }
 0x160   : > { %v1056_v63 = vmul.f32 %v1048_v50, %v2650_v23  ;;  %v1124_v52 = vmul.f32 0.5, %v1116_v34  ;;  %v1131_v0 = vmul.f32 %v1123_v31, %v2602_v7  ;;  %v1140_v44 = vpack.c.bf16 %v1134_v32, %v1133_v53 }
 0x161   : > { %v1074_v35 = vmul.f32 %v1066_v47, %v1066_v47  ;;  %v1033_v16 = vpop.permute.xlu1 %1032  ;;  %v1005_v23 = vadd.f32 %v997_v54, %v945_v25  ;;  %v1103_v37 = vmul.f32 0.7978846, %v1095_v17 }
 0x162   : > { %v1064_v20 = vadd.f32 %v1056_v63, %v1004_v46  ;;  %v1049_v1 = vmul.f32 %v2383_v8, %v1033_v16  ;;  %v1132_v9 = vmul.f32 %v1124_v52, %v2616_v26 }
 0x163   : > { %v1082_v38 = vmul.f32 %v1074_v35, %v1066_v47  ;;  %1701 = vtanh.f32 %v1103_v37 }
 0x164   : > { %v1072_v13 = vmul.f32 %v1064_v20, %v1064_v20  ;;  %v1057_v59 = vmul.f32 %v1049_v1, %v2477_v56  ;;  %v1139_v12 = vpack.c.bf16 %v1132_v9, %v1131_v0 }
 0x165   : > { %v1090_v49 = vmul.f32 0.044715, %v1082_v38 }
 0x166   : > { %v1080_v36 = vmul.f32 %v1072_v13, %v1064_v20  ;;  %v1065_v40 = vadd.f32 %v1057_v59, %v1005_v23  ;;  %1561 = vmatprep.mubr.bf16.mxu1 %v1139_v12 }
 0x167   : > { %v1098_v10 = vadd.f32 %v1090_v49, %v1066_v47  ;;  %1562 = vmatmul.mubr.bf16.vlgmr.msra.gmra.mxu1 %v1140_v44 }
 0x168   : > { %v1088_v24 = vmul.f32 0.044715, %v1080_v36  ;;  %v1073_v3 = vmul.f32 %v1065_v40, %v1065_v40 }
 0x169   : > { %v1106_v8 = vmul.f32 0.7978846, %v1098_v10 }
 0x16a   : > { %v1096_v19 = vadd.f32 %v1088_v24, %v1064_v20  ;;  %v1081_v7 = vmul.f32 %v1073_v3, %v1065_v40 }
 0x16b   : > { %1703 = vtanh.f32 %v1106_v8 }
 0x16c   : > { %v1089_v28 = vmul.f32 0.044715, %v1081_v7  ;;  %v1104_v60 = vmul.f32 0.7978846, %v1096_v19 }
 0x16e   : > { %v1097_v56 = vadd.f32 %v1089_v28, %v1065_v40  ;;  %1705 = vtanh.f32 %v1104_v60 }
 0x170   : > { %v1105_v22 = vmul.f32 0.7978846, %v1097_v56  ;;  %v1702_v26 = vpop.eup %1701 }
 0x171   : > { %v1119_v43 = vadd.f32 1.0, %v1702_v26 }
 0x172   : > { %1707 = vtanh.f32 %v1105_v22 }
 0x173   : > { %v1127_v6 = vmul.f32 0.5, %v1119_v43 }
 0x175   : > { %v1135_v18 = vmul.f32 %v1127_v6, %v2684_v42 }
 0x178   : > { %v1704_v29 = vpop.eup %1703 }
 0x179   : > { %v1122_v2 = vadd.f32 1.0, %v1704_v29 }
 0x17b   : > { %v1706_v15 = vpop.eup %1705  ;;  %v1130_v14 = vmul.f32 0.5, %v1122_v2 }
 0x17c   : > { %v1120_v27 = vadd.f32 1.0, %v1706_v15 }
 0x17d   : > { %v1138_v5 = vmul.f32 %v1130_v14, %v1066_v47 }
 0x17e   : > { %v1128_v51 = vmul.f32 0.5, %v1120_v27 }
 0x17f   : > { %v1708_v33 = vpop.eup %1707 }
 0x180   : > { %v1136_v39 = vmul.f32 %v1128_v51, %v1064_v20  ;;  %v1121_v58 = vadd.f32 1.0, %v1708_v33 }
 0x182   : > { %v1141_v62 = vpack.c.bf16 %v1136_v39, %v1135_v18  ;;  %v1129_v48 = vmul.f32 0.5, %v1121_v58 }
 0x184   : > { %1565 = vmatprep.mubr.bf16.mxu1 %v1141_v62  ;;  %v1137_v57 = vmul.f32 %v1129_v48, %v1065_v40 }
 0x186   : > { %v1142_v55 = vpack.c.bf16 %v1138_v5, %v1137_v57 }
 0x188   : > { %1566 = vmatmul.mubr.bf16.gmra.mxu1 %v1142_v55 }
 0x227   : > { %v1563_v4 = vpop.f32.mrf.mxu1 }
 0x228   : > { %v1257_v50 = vadd.f32 %v1563_v4, %v1443_v45 }
 0x229   : > { %v1248_v46 = vpop.f32.mrf.mxu1 }
 0x22a   : > { %v1249_v61 = vadd.f32 %v1443_v45, %v1248_v46 }
 0x22b   : > { %v1564_v42 = vpop.f32.mrf.mxu1 }
 0x22c   : > { %v1260_v11 = vadd.f32 %v1564_v42, %v1443_v45 }
 0x22d   : > { %v1251_v30 = vpop.f32.mrf.mxu1 }
 0x22e   : > { %v1482_v41 = vpack.c.bf16 %v1260_v11, %v1257_v50  ;;  %v1252_v21 = vadd.f32 %v1443_v45, %v1251_v30 }
 0x230   : > { %1494 = vst [vmem:[%s329_s25 + $0x8] sm:$0xff] %v1482_v41   ;;  %v1477_v47 = vpack.c.bf16 %v1252_v21, %v1249_v61 }
 0x232   : > { %1478 = vst [vmem:[%s329_s25] sm:$0xff] %v1477_v47  }
 0x248   : > { %v1567_v54 = vpop.f32.mrf.mxu1 }
 0x249   : > { %v1273_v17 = vadd.f32 %v1567_v54, %v1443_v45 }
 0x24a   : > { %v1264_v63 = vpop.f32.mrf.mxu1 }
 0x24b   : > { %v1265_v31 = vadd.f32 %v1443_v45, %v1264_v63 }
 0x24c   : > { %v1568_v53 = vpop.f32.mrf.mxu1 }
 0x24d   : > { %v1276_v35 = vadd.f32 %v1568_v53, %v1443_v45 }
 0x24e   : > { %v1267_v34 = vpop.f32.mrf.mxu1 }
 0x24f   : > { %v1492_v32 = vpack.c.bf16 %v1276_v35, %v1273_v17  ;;  %v1268_v16 = vadd.f32 %v1443_v45, %v1267_v34 }
 0x251   : > { %1496 = vst [vmem:[%s329_s25 + $0x18] sm:$0xff] %v1492_v32   ;;  %v1487_v25 = vpack.c.bf16 %v1268_v16, %v1265_v31 }
 0x253   : > { %1495 = vst [vmem:[%s329_s25 + $0x10] sm:$0xff] %v1487_v25  }
 0x254   : > { %1774 = shalt.err (!%p1771_p3)
}
 0x255   : > { %s1775_s21 = scalar_lea.hbm %s2726_s18, 512  ;;  %s1779_s25 = scalar_lea.hbm %s2778_s8, 1024 }
 0x256   : > { %p1776_p2 = scmp.ne.s32.totalorder %s2726_s18, %s1775_s21  ;;  %p1780_p7 = scmp.lt.s32.totalorder %s2726_s18, %s2778_s8 }
 0x257   : > { %p1781_p6 = scmp.lt.s32.totalorder %s1779_s25, %s1775_s21 }
 0x258   : > { %p1777_p4 = pnand %p1776_p2, %p1929_p5 }
 0x259   : > { %p1782_p9 = por %p1781_p6, %p1780_p7 }
 0x25a   : > { %p1778_p13 = pneg %p1777_p4 }
 0x25c   : > { %p1783_p10 = pnand %p1782_p9, %p1778_p13 }
 0x25e   : > { %1786 = shalt.err (!%p1783_p10)
}
 0x25f   : > { %s1844_s13 = smov 64   ;;  %s1845_s9 = smov 4  }
 0x260   : > { %1577 = dma.vmem_to_hbm [thread:$0]  (%p1929_p5), %s2721_s26, 512, %s2726_s18, %s2730_s17, %s1844_s13, %s1844_s13, %s1845_s9  }
 0x261 PF: > { %p1594_p12 = scmp.ge.s32.totalorder %s1829_s30, 2  ;;  %s1348_s19 = sand.u32 1, %s1817_s27  }
 0x262   : > { %p2863_p8 = scmp.ne.s32.totalorder %s2797_s16, 0  ;;  %s1349_s20 = scalar_lea.sflag [#allocation4], %s1348_s19 }
 0x264   : > { %p1587_p11 = pnand %p1594_p12, %p2863_p8 }
 0x266   : > { %p1588_p0 = pneg %p1587_p11 }
 0x268   : > { %1812 = dma.done.wait (%p1588_p0), %s1349_s20, 512  }
 0x269   : > { %1814 = vsyncadd (%p1588_p0), %s1349_s20, 4294966784  ;;  %p20_p1 = scmp.ge.s32.totalorder %s1916_s11, 4   ;;  %s2864_s27 = smov %s1821_s28 }
 0x26a   : > { %s2865_s28 = smov %s1825_s29  ;;  %s2866_s29 = smov %s1927_s14 }
 0x26b   : > { %s2867_s30 = smov %s1916_s11  ;;  %22 = sbr.rel (!%p20_p1) target bundleno = 5 (0x5), region = 96 }
 0x270   :  { %1354 = vsyncpa [#allocation3], 1 }
 0x271   :  { %1356 = vsyncpa [#allocation3 + $0x1], 1 }
 0x272   :  { %1357 = vsyncpa [#allocation6], 1 }
 0x273   :  { %1358 = vsyncpa [#allocation4], 1 }
 0x274   :  { %1360 = vsyncpa [#allocation4 + $0x1], 1 }

</bundles_post_ra>
